<compile_context>
chip_gen: v7x
topology: tpu7x:2x2x1
jax: 0.10.0
libtpu: 0.0.40
codegen_flags: <defaults>
</compile_context>

<pallas_src>
import jax
import jax.numpy as jnp
from jax.experimental import pallas as pl
from jax.experimental.pallas import tpu as pltpu

# Below this size, launching any kernel costs more than it could ever save.
_SMALL_BYPASS_BYTES = 256 * 1024
# Only split the fallback copy for very large transfers (modest win; gated).
_CHUNKED_COPY_MIN_BYTES = 256 * 1024 * 1024
_MAX_COPY_CHUNKS = 4


# ---------------------------------------------------------------------------
# Zero-copy path: output aliased to input, kernel body does nothing.
# ---------------------------------------------------------------------------
def _identity_alias_kernel(x_hbm_ref, o_hbm_ref):
    # input_output_aliases={0: 0}: the output buffer is the input buffer, so
    # the result is already materialized. Nothing to compute, nothing to move.
    del x_hbm_ref, o_hbm_ref


def _identity_aliased_call(x: jax.Array) -> jax.Array:
    return pl.pallas_call(
        _identity_alias_kernel,
        out_shape=jax.ShapeDtypeStruct(x.shape, x.dtype),
        in_specs=[pl.BlockSpec(memory_space=pl.ANY)],
        out_specs=pl.BlockSpec(memory_space=pl.ANY),
        input_output_aliases={0: 0},
        # Zero HBM traffic when the caller donates x; tell XLA exactly that.
        cost_estimate=pl.CostEstimate(flops=0, transcendentals=0, bytes_accessed=0),
    )(x)


# ---------------------------------------------------------------------------
# Materialized-copy fallback: direct HBM -> HBM DMA (no VMEM round trip).
# ---------------------------------------------------------------------------
def _make_copy_kernel(n_chunks: int, rows_per_chunk: int):
    def kernel(x_hbm_ref, o_hbm_ref, sem):
        if n_chunks == 1:
            cp = pltpu.make_async_copy(x_hbm_ref, o_hbm_ref, sem)
            cp.start()
            cp.wait()
        else:
            copies = []
            for c in range(n_chunks):
                rows = pl.ds(c * rows_per_chunk, rows_per_chunk)
                copies.append(
                    pltpu.make_async_copy(
                        x_hbm_ref.at[rows], o_hbm_ref.at[rows], sem.at[c]
                    )
                )
            for cp in copies:  # all descriptors in flight before any wait
                cp.start()
            for cp in copies:
                cp.wait()

    return kernel


def _identity_copy_call(x: jax.Array) -> jax.Array:
    nbytes = x.size * x.dtype.itemsize
    n_chunks = 1
    if (
        nbytes >= _CHUNKED_COPY_MIN_BYTES
        and x.ndim >= 1
        and x.shape[0] % _MAX_COPY_CHUNKS == 0
    ):
        n_chunks = _MAX_COPY_CHUNKS
    rows_per_chunk = x.shape[0] // n_chunks if (x.ndim >= 1 and n_chunks > 1) else 0
    sem_shape = () if n_chunks == 1 else (n_chunks,)

    return pl.pallas_call(
        _make_copy_kernel(n_chunks, rows_per_chunk),
        out_shape=jax.ShapeDtypeStruct(x.shape, x.dtype),
        in_specs=[pl.BlockSpec(memory_space=pl.ANY)],
        out_specs=pl.BlockSpec(memory_space=pl.ANY),
        scratch_shapes=[pltpu.SemaphoreType.DMA(sem_shape)],
        cost_estimate=pl.CostEstimate(
            flops=0, transcendentals=0, bytes_accessed=2 * nbytes
        ),
    )(x)


# ---------------------------------------------------------------------------
# Wrapper: Identity.forward semantics.
# ---------------------------------------------------------------------------
def identity(
    x: jax.Array,
    *,
    force_copy: bool = False,
    min_kernel_bytes: int = _SMALL_BYPASS_BYTES,
) -> jax.Array:
    """Pallas implementation of Identity.forward: returns x unchanged.

    Default: tiny tensors are returned as-is (no kernel launch); larger
    tensors go through an aliased no-op pallas_call, which is zero-traffic
    when the caller donates x (jax.jit donate_argnums).
    force_copy=True: materialize a fresh buffer via HBM->HBM DMA (only needed
    when aliasing/donation is impossible at the call site).
    """
    nbytes = x.size * x.dtype.itemsize
    if force_copy:
        if x.size == 0:
            return x
        return _identity_copy_call(x)
    if nbytes < min_kernel_bytes:
        # Tiny (or empty) tensor: dispatch overhead dwarfs any possible gain.
        return x
    return _identity_aliased_call(x)


if __name__ == "__main__":
    key = jax.random.PRNGKey(0)
    # Small NCHW input consistent with how Identity is used in minimagen.
    x = jax.random.normal(key, (2, 4, 16, 16), dtype=jnp.float32)

    # 1) Default Identity path: small tensor -> bypass the kernel, return x.
    y_bypass = jax.block_until_ready(identity(x))
    assert y_bypass.shape == x.shape and y_bypass.dtype == x.dtype
    assert bool(jnp.array_equal(y_bypass, x))

    # 2) Zero-copy aliased kernel path, with the input donated so the output
    #    genuinely reuses the input buffer (min_kernel_bytes=0 forces the
    #    kernel even at this small demo size).
    donor = jnp.array(x, copy=True)  # separate buffer we are allowed to give up
    aliased_fn = jax.jit(
        lambda t: identity(t, min_kernel_bytes=0), donate_argnums=0
    )
    y_alias = jax.block_until_ready(aliased_fn(donor))
    assert y_alias.shape == x.shape and y_alias.dtype == x.dtype
    assert bool(jnp.array_equal(y_alias, x))

    # 3) Materialized-copy fallback: single HBM->HBM DMA into a fresh buffer.
    y_copy = jax.block_until_ready(identity(x, force_copy=True))
    assert y_copy.shape == x.shape and y_copy.dtype == x.dtype
    assert bool(jnp.array_equal(y_copy, x))

    print("KERNEL_OK")
</pallas_src>

<mosaic_0001>
module attributes {stable_mosaic.version = 11 : i64} {
  func.func @_identity_alias_kernel(%arg0: memref<2x4x16x16xf32, #tpu.memory_space<any>>, %arg1: memref<2x4x16x16xf32, #tpu.memory_space<any>>) attributes {dimension_semantics = [], scalar_prefetch = 0 : i64, scratch_operands = 0 : i64, tpu.core_type = #tpu.core_type<tc>} {
    return
  }
}

</mosaic_0001>

<bundles_post_ra>
// kernel: _lambda_.1
= control target key start
LH: loop header
LB: loop body
LE: loop exit
PB: predicated region body
PF: predicated region fallthrough
CT: control target
= control target key end

     0   :  { %s16_s0 = inlined_call_operand.hbm [shape: f32[2,4,16,16], index: 0, kind: input, shape index: {}, may-alias: {0,1}]   ;;  %s17_s1 = inlined_call_operand.hbm [shape: f32[2,4,16,16], index: 1, kind: output, shape index: {}, may-alias: {0,1}]  }

</bundles_post_ra>
